<compile_context>
chip_gen: v5e
topology: v5e:2x2
jax: 0.10.0
libtpu: 0.0.40
codegen_flags: <defaults>
</compile_context>

<pallas_src>
import functools

import jax
import jax.numpy as jnp
from jax.experimental import pallas as pl
from jax.experimental.pallas import tpu as pltpu


def _layernorm(h, gamma, beta, eps=1e-5):
    mu = jnp.mean(h, axis=-1, keepdims=True)
    var = jnp.mean((h - mu) ** 2, axis=-1, keepdims=True)
    return (h - mu) * jax.lax.rsqrt(var + eps) * gamma + beta


def encoder_block_kernel(
    x_ref,
    wqT_ref, wkT_ref, wvT_ref, bq_ref, bk_ref, bv_ref,
    woT_ref, bo_ref,
    g1_ref, beta1_ref,
    w1T_ref, bf1_ref, w2T_ref, bf2_ref,
    g2_ref, beta2_ref,
    o_ref,
    *, num_heads, batch, seq,
):
    B, K, H = batch, seq, num_heads
    M, E = x_ref.shape                      # M = B*K (batch folded into GEMM M)
    D = E // H
    scale = 1.0 / float(D) ** 0.5

    # Hoisted single loads of biases / LayerNorm params.
    bq, bk, bv, bo = bq_ref[...], bk_ref[...], bv_ref[...], bo_ref[...]
    bf1, bf2 = bf1_ref[...], bf2_ref[...]
    g1, beta1 = g1_ref[...], beta1_ref[...]
    g2, beta2 = g2_ref[...], beta2_ref[...]

    x = x_ref[...].astype(jnp.float32)                      # (M, E)

    # ---- QKV projections: (M,E)x(E,E) GEMMs, weights already transposed.
    # 1/sqrt(D) folded into q here (cheaper than scaling the (K,K) scores).
    q = (jnp.dot(x, wqT_ref[...], preferred_element_type=jnp.float32) + bq) * scale
    k = jnp.dot(x, wkT_ref[...], preferred_element_type=jnp.float32) + bk
    v = jnp.dot(x, wvT_ref[...], preferred_element_type=jnp.float32) + bv

    # ---- Multi-head self-attention with all (batch, head) pairs batched into
    # a single einsum sequence.  Head split = D-aligned lane slice + leading-
    # dim reshape + leading-axis concat (no in-kernel transposes).
    def split_heads(t):                                     # (M, E) -> (H*B, K, D)
        return jnp.concatenate(
            [t[:, h * D:(h + 1) * D].reshape(B, K, D) for h in range(H)], axis=0)

    qs, ks, vs = split_heads(q), split_heads(k), split_heads(v)

    s = jnp.einsum("bqd,bkd->bqk", qs, ks,
                   preferred_element_type=jnp.float32)      # (H*B, K, K)
    s = s - jnp.max(s, axis=-1, keepdims=True)
    p = jnp.exp(s)
    p = p * pl.reciprocal(jnp.sum(p, axis=-1, keepdims=True), approx=True)
    ctx = jnp.einsum("bqk,bkd->bqd", p, vs,
                     preferred_element_type=jnp.float32)    # (H*B, K, D)

    # Head merge back to (M, E): leading-dim slice/reshape + one lane concat.
    attn = jnp.concatenate(
        [ctx[h * B:(h + 1) * B].reshape(M, D) for h in range(H)], axis=-1)

    out1 = jnp.dot(attn, woT_ref[...], preferred_element_type=jnp.float32) + bo

    # ---- dropout (identity) + residual + LayerNorm 1 (f32 VPU math).
    h1 = _layernorm(x + out1, g1, beta1)

    # ---- FeedForward: Linear -> ReLU -> Linear.
    ff = jnp.maximum(
        jnp.dot(h1, w1T_ref[...], preferred_element_type=jnp.float32) + bf1, 0.0)
    out3 = jnp.dot(ff, w2T_ref[...], preferred_element_type=jnp.float32) + bf2

    # ---- dropout (identity) + residual + LayerNorm 2.
    out = _layernorm(out3 + h1, g2, beta2)
    o_ref[...] = out.astype(o_ref.dtype)


def encoder_block(x, params, num_heads, *, batch_block=None):
    N, K, E = x.shape
    F = params["w1"].shape[0]
    H = num_heads
    D = E // H
    bn = N if batch_block is None else batch_block
    assert N % bn == 0, "batch_block must divide the batch size"
    grid = (N // bn,)

    # One-time host-side layout work (plain XLA ops, outside the kernel):
    # fold batch into the GEMM M dim and pre-transpose every weight.
    x2d = x.reshape(N * K, E)
    wqT, wkT, wvT = params["wq"].T, params["wk"].T, params["wv"].T
    woT, w1T, w2T = params["wo"].T, params["w1"].T, params["w2"].T

    def inv(shape):   # grid-invariant operand (weights / biases / LN params)
        return pl.BlockSpec(shape, lambda i: (0,) * len(shape))

    in_specs = [
        pl.BlockSpec((bn * K, E), lambda i: (i, 0)),          # x slab
        inv((E, E)), inv((E, E)), inv((E, E)),                # WqT, WkT, WvT
        inv((1, E)), inv((1, E)), inv((1, E)),                # bq, bk, bv
        inv((E, E)), inv((1, E)),                             # WoT, bo
        inv((1, E)), inv((1, E)),                             # LN1 gamma, beta
        inv((E, F)), inv((1, F)), inv((F, E)), inv((1, E)),   # W1T, b1, W2T, b2
        inv((1, E)), inv((1, E)),                             # LN2 gamma, beta
    ]
    out_specs = pl.BlockSpec((bn * K, E), lambda i: (i, 0))

    flops = int(2 * N * K * E * (4 * E + 2 * F)    # QKV + out-proj + 2 FFN GEMMs
                + 4 * N * H * K * K * D)           # scores + P.V
    transcendentals = int(N * H * K * K + N * H * K + 4 * N * K)
    bytes_accessed = int(4 * (2 * N * K * E + 4 * E * E + 2 * E * F + 7 * E + F))

    kernel = functools.partial(encoder_block_kernel, num_heads=H, batch=bn, seq=K)

    out2d = pl.pallas_call(
        kernel,
        out_shape=jax.ShapeDtypeStruct((N * K, E), x.dtype),
        grid=grid,
        in_specs=in_specs,
        out_specs=out_specs,
        compiler_params=pltpu.CompilerParams(dimension_semantics=("parallel",)),
        cost_estimate=pl.CostEstimate(flops=flops,
                                      transcendentals=transcendentals,
                                      bytes_accessed=bytes_accessed),
    )(
        x2d,
        wqT, wkT, wvT,
        params["bq"], params["bk"], params["bv"],
        woT, params["bo"],
        params["g1"], params["beta1"],
        w1T, params["bf1"], w2T, params["bf2"],
        params["g2"], params["beta2"],
    )
    return out2d.reshape(N, K, E)


def reference_jax(x, params, num_heads):
    """Pure-JAX reference with identical semantics (for sanity checking)."""
    N, K, E = x.shape
    D = E // num_heads
    scale = 1.0 / (D ** 0.5)

    def one(xb):
        q = xb @ params["wq"].T + params["bq"][0]
        k = xb @ params["wk"].T + params["bk"][0]
        v = xb @ params["wv"].T + params["bv"][0]
        heads = []
        for h in range(num_heads):
            qh, kh, vh = (t[:, h * D:(h + 1) * D] for t in (q, k, v))
            s = qh @ kh.T * scale
            p = jax.nn.softmax(s, axis=-1)
            heads.append(p @ vh)
        attn = jnp.concatenate(heads, axis=-1)
        out1 = attn @ params["wo"].T + params["bo"][0]

        def ln(h, g, b):
            mu = jnp.mean(h, -1, keepdims=True)
            var = jnp.mean((h - mu) ** 2, -1, keepdims=True)
            return (h - mu) * jax.lax.rsqrt(var + 1e-5) * g + b

        out2 = ln(xb + out1, params["g1"][0], params["beta1"][0])
        ff = jnp.maximum(out2 @ params["w1"].T + params["bf1"][0], 0.0)
        out3 = ff @ params["w2"].T + params["bf2"][0]
        return ln(out3 + out2, params["g2"][0], params["beta2"][0])

    return jax.vmap(one)(x)


if __name__ == "__main__":
    N, K, E, H, F = 2, 8, 32, 4, 64  # batch, seq, emb_dim, num_heads, ff_dim
    key = jax.random.PRNGKey(0)
    ks = jax.random.split(key, 12)

    def init(k, shape, scale=0.05):
        return (scale * jax.random.normal(k, shape)).astype(jnp.float32)

    # nn.MultiheadAttention: in_proj_weight (3E, E) -> split into Wq/Wk/Wv
    in_proj_w = init(ks[0], (3 * E, E))
    in_proj_b = init(ks[1], (3 * E,))
    params = {
        "wq": in_proj_w[0 * E:1 * E], "wk": in_proj_w[1 * E:2 * E], "wv": in_proj_w[2 * E:3 * E],
        "bq": in_proj_b[0 * E:1 * E].reshape(1, E),
        "bk": in_proj_b[1 * E:2 * E].reshape(1, E),
        "bv": in_proj_b[2 * E:3 * E].reshape(1, E),
        "wo": init(ks[2], (E, E)), "bo": init(ks[3], (E,)).reshape(1, E),
        "g1": jnp.ones((1, E), jnp.float32), "beta1": jnp.zeros((1, E), jnp.float32),
        "w1": init(ks[4], (F, E)), "bf1": init(ks[5], (F,)).reshape(1, F),
        "w2": init(ks[6], (E, F)), "bf2": init(ks[7], (E,)).reshape(1, E),
        "g2": jnp.ones((1, E), jnp.float32), "beta2": jnp.zeros((1, E), jnp.float32),
    }

    x = jax.random.normal(ks[8], (N, K, E), dtype=jnp.float32)

    out = encoder_block(x, params, H)
    out = jax.block_until_ready(out)

    ref = reference_jax(x, params, H)
    assert out.shape == (N, K, E)
    max_err = float(jnp.max(jnp.abs(out - ref)))
    # Tolerance covers the approximate (EUP) reciprocal in the softmax.
    assert max_err < 2e-3, f"mismatch vs JAX reference (max abs err {max_err})"

    print("KERNEL_OK")
</pallas_src>

<mosaic_0001>
module attributes {stable_mosaic.version = 11 : i64} {
  func.func @encoder_block_kernel(%arg0: i32, %arg1: memref<16x32xf32, #tpu.memory_space<vmem>>, %arg2: memref<32x32xf32, #tpu.memory_space<vmem>>, %arg3: memref<32x32xf32, #tpu.memory_space<vmem>>, %arg4: memref<32x32xf32, #tpu.memory_space<vmem>>, %arg5: memref<1x32xf32, #tpu.memory_space<vmem>>, %arg6: memref<1x32xf32, #tpu.memory_space<vmem>>, %arg7: memref<1x32xf32, #tpu.memory_space<vmem>>, %arg8: memref<32x32xf32, #tpu.memory_space<vmem>>, %arg9: memref<1x32xf32, #tpu.memory_space<vmem>>, %arg10: memref<1x32xf32, #tpu.memory_space<vmem>>, %arg11: memref<1x32xf32, #tpu.memory_space<vmem>>, %arg12: memref<32x64xf32, #tpu.memory_space<vmem>>, %arg13: memref<1x64xf32, #tpu.memory_space<vmem>>, %arg14: memref<64x32xf32, #tpu.memory_space<vmem>>, %arg15: memref<1x32xf32, #tpu.memory_space<vmem>>, %arg16: memref<1x32xf32, #tpu.memory_space<vmem>>, %arg17: memref<1x32xf32, #tpu.memory_space<vmem>>, %arg18: memref<16x32xf32, #tpu.memory_space<vmem>>) attributes {dimension_semantics = [#tpu.dimension_semantics<parallel>], iteration_bounds = array<i64: 1>, scalar_prefetch = 0 : i64, scratch_operands = 0 : i64, tpu.core_type = #tpu.core_type<tc>, window_params = [{transform_indices = @transform_0, window_bounds = array<i64: 16, 32>}, {pipeline_mode = #tpu.pipeline_mode<synchronous>, transform_indices = @transform_1, window_bounds = array<i64: 32, 32>}, {pipeline_mode = #tpu.pipeline_mode<synchronous>, transform_indices = @transform_2, window_bounds = array<i64: 32, 32>}, {pipeline_mode = #tpu.pipeline_mode<synchronous>, transform_indices = @transform_3, window_bounds = array<i64: 32, 32>}, {pipeline_mode = #tpu.pipeline_mode<synchronous>, transform_indices = @transform_4, window_bounds = array<i64: 1, 32>}, {pipeline_mode = #tpu.pipeline_mode<synchronous>, transform_indices = @transform_5, window_bounds = array<i64: 1, 32>}, {pipeline_mode = #tpu.pipeline_mode<synchronous>, transform_indices = @transform_6, window_bounds = array<i64: 1, 32>}, {pipeline_mode = #tpu.pipeline_mode<synchronous>, transform_indices = @transform_7, window_bounds = array<i64: 32, 32>}, {pipeline_mode = #tpu.pipeline_mode<synchronous>, transform_indices = @transform_8, window_bounds = array<i64: 1, 32>}, {pipeline_mode = #tpu.pipeline_mode<synchronous>, transform_indices = @transform_9, window_bounds = array<i64: 1, 32>}, {pipeline_mode = #tpu.pipeline_mode<synchronous>, transform_indices = @transform_10, window_bounds = array<i64: 1, 32>}, {pipeline_mode = #tpu.pipeline_mode<synchronous>, transform_indices = @transform_11, window_bounds = array<i64: 32, 64>}, {pipeline_mode = #tpu.pipeline_mode<synchronous>, transform_indices = @transform_12, window_bounds = array<i64: 1, 64>}, {pipeline_mode = #tpu.pipeline_mode<synchronous>, transform_indices = @transform_13, window_bounds = array<i64: 64, 32>}, {pipeline_mode = #tpu.pipeline_mode<synchronous>, transform_indices = @transform_14, window_bounds = array<i64: 1, 32>}, {pipeline_mode = #tpu.pipeline_mode<synchronous>, transform_indices = @transform_15, window_bounds = array<i64: 1, 32>}, {pipeline_mode = #tpu.pipeline_mode<synchronous>, transform_indices = @transform_16, window_bounds = array<i64: 1, 32>}, {transform_indices = @transform_17, window_bounds = array<i64: 16, 32>}]} {
    %c0 = arith.constant 0 : index
    %c0_0 = arith.constant 0 : index
    %0 = vector.load %arg5[%c0, %c0_0] : memref<1x32xf32, #tpu.memory_space<vmem>>, vector<1x32xf32>
    %c0_1 = arith.constant 0 : index
    %c0_2 = arith.constant 0 : index
    %1 = vector.load %arg6[%c0_1, %c0_2] : memref<1x32xf32, #tpu.memory_space<vmem>>, vector<1x32xf32>
    %c0_3 = arith.constant 0 : index
    %c0_4 = arith.constant 0 : index
    %2 = vector.load %arg7[%c0_3, %c0_4] : memref<1x32xf32, #tpu.memory_space<vmem>>, vector<1x32xf32>
    %c0_5 = arith.constant 0 : index
    %c0_6 = arith.constant 0 : index
    %3 = vector.load %arg9[%c0_5, %c0_6] : memref<1x32xf32, #tpu.memory_space<vmem>>, vector<1x32xf32>
    %c0_7 = arith.constant 0 : index
    %c0_8 = arith.constant 0 : index
    %4 = vector.load %arg13[%c0_7, %c0_8] : memref<1x64xf32, #tpu.memory_space<vmem>>, vector<1x64xf32>
    %c0_9 = arith.constant 0 : index
    %c0_10 = arith.constant 0 : index
    %5 = vector.load %arg15[%c0_9, %c0_10] : memref<1x32xf32, #tpu.memory_space<vmem>>, vector<1x32xf32>
    %c0_11 = arith.constant 0 : index
    %c0_12 = arith.constant 0 : index
    %6 = vector.load %arg10[%c0_11, %c0_12] : memref<1x32xf32, #tpu.memory_space<vmem>>, vector<1x32xf32>
    %c0_13 = arith.constant 0 : index
    %c0_14 = arith.constant 0 : index
    %7 = vector.load %arg11[%c0_13, %c0_14] : memref<1x32xf32, #tpu.memory_space<vmem>>, vector<1x32xf32>
    %c0_15 = arith.constant 0 : index
    %c0_16 = arith.constant 0 : index
    %8 = vector.load %arg16[%c0_15, %c0_16] : memref<1x32xf32, #tpu.memory_space<vmem>>, vector<1x32xf32>
    %c0_17 = arith.constant 0 : index
    %c0_18 = arith.constant 0 : index
    %9 = vector.load %arg17[%c0_17, %c0_18] : memref<1x32xf32, #tpu.memory_space<vmem>>, vector<1x32xf32>
    %c0_19 = arith.constant 0 : index
    %c0_20 = arith.constant 0 : index
    %10 = vector.load %arg1[%c0_19, %c0_20] : memref<16x32xf32, #tpu.memory_space<vmem>>, vector<16x32xf32>
    %c0_21 = arith.constant 0 : index
    %c0_22 = arith.constant 0 : index
    %11 = vector.load %arg2[%c0_21, %c0_22] : memref<32x32xf32, #tpu.memory_space<vmem>>, vector<32x32xf32>
    %cst = arith.constant dense<0.000000e+00> : vector<16x32xf32>
    %12 = tpu.matmul %10, %11, %cst {dimension_numbers = #tpu.dot_dimension_numbers<[1], [0], [0], [1], [0, 0, 1, 1], [], []>} : vector<16x32xf32>, vector<32x32xf32>, vector<16x32xf32> -> vector<16x32xf32>
    %13 = vector.broadcast %0 : vector<1x32xf32> to vector<16x32xf32>
    %14 = arith.addf %12, %13 : vector<16x32xf32>
    %cst_23 = arith.constant 0.353553385 : f32
    %15 = vector.broadcast %cst_23 : f32 to vector<16x32xf32>
    %16 = arith.mulf %14, %15 : vector<16x32xf32>
    %c0_24 = arith.constant 0 : index
    %c0_25 = arith.constant 0 : index
    %17 = vector.load %arg3[%c0_24, %c0_25] : memref<32x32xf32, #tpu.memory_space<vmem>>, vector<32x32xf32>
    %cst_26 = arith.constant dense<0.000000e+00> : vector<16x32xf32>
    %18 = tpu.matmul %10, %17, %cst_26 {dimension_numbers = #tpu.dot_dimension_numbers<[1], [0], [0], [1], [0, 0, 1, 1], [], []>} : vector<16x32xf32>, vector<32x32xf32>, vector<16x32xf32> -> vector<16x32xf32>
    %19 = vector.broadcast %1 : vector<1x32xf32> to vector<16x32xf32>
    %20 = arith.addf %18, %19 : vector<16x32xf32>
    %c0_27 = arith.constant 0 : index
    %c0_28 = arith.constant 0 : index
    %21 = vector.load %arg4[%c0_27, %c0_28] : memref<32x32xf32, #tpu.memory_space<vmem>>, vector<32x32xf32>
    %cst_29 = arith.constant dense<0.000000e+00> : vector<16x32xf32>
    %22 = tpu.matmul %10, %21, %cst_29 {dimension_numbers = #tpu.dot_dimension_numbers<[1], [0], [0], [1], [0, 0, 1, 1], [], []>} : vector<16x32xf32>, vector<32x32xf32>, vector<16x32xf32> -> vector<16x32xf32>
    %23 = vector.broadcast %2 : vector<1x32xf32> to vector<16x32xf32>
    %24 = arith.addf %22, %23 : vector<16x32xf32>
    %25 = vector.extract_strided_slice %16 {offsets = [0, 0], sizes = [16, 8], strides = [1, 1]} : vector<16x32xf32> to vector<16x8xf32>
    %26 = vector.shape_cast %25 : vector<16x8xf32> to vector<2x8x8xf32>
    %27 = vector.extract_strided_slice %16 {offsets = [0, 8], sizes = [16, 8], strides = [1, 1]} : vector<16x32xf32> to vector<16x8xf32>
    %28 = vector.shape_cast %27 : vector<16x8xf32> to vector<2x8x8xf32>
    %29 = vector.extract_strided_slice %16 {offsets = [0, 16], sizes = [16, 8], strides = [1, 1]} : vector<16x32xf32> to vector<16x8xf32>
    %30 = vector.shape_cast %29 : vector<16x8xf32> to vector<2x8x8xf32>
    %31 = vector.extract_strided_slice %16 {offsets = [0, 24], sizes = [16, 8], strides = [1, 1]} : vector<16x32xf32> to vector<16x8xf32>
    %32 = vector.shape_cast %31 : vector<16x8xf32> to vector<2x8x8xf32>
    %33 = tpu.concatenate %26, %28, %30, %32 in 0 : vector<2x8x8xf32>, vector<2x8x8xf32>, vector<2x8x8xf32>, vector<2x8x8xf32> -> vector<8x8x8xf32>
    %34 = vector.extract_strided_slice %20 {offsets = [0, 0], sizes = [16, 8], strides = [1, 1]} : vector<16x32xf32> to vector<16x8xf32>
    %35 = vector.shape_cast %34 : vector<16x8xf32> to vector<2x8x8xf32>
    %36 = vector.extract_strided_slice %20 {offsets = [0, 8], sizes = [16, 8], strides = [1, 1]} : vector<16x32xf32> to vector<16x8xf32>
    %37 = vector.shape_cast %36 : vector<16x8xf32> to vector<2x8x8xf32>
    %38 = vector.extract_strided_slice %20 {offsets = [0, 16], sizes = [16, 8], strides = [1, 1]} : vector<16x32xf32> to vector<16x8xf32>
    %39 = vector.shape_cast %38 : vector<16x8xf32> to vector<2x8x8xf32>
    %40 = vector.extract_strided_slice %20 {offsets = [0, 24], sizes = [16, 8], strides = [1, 1]} : vector<16x32xf32> to vector<16x8xf32>
    %41 = vector.shape_cast %40 : vector<16x8xf32> to vector<2x8x8xf32>
    %42 = tpu.concatenate %35, %37, %39, %41 in 0 : vector<2x8x8xf32>, vector<2x8x8xf32>, vector<2x8x8xf32>, vector<2x8x8xf32> -> vector<8x8x8xf32>
    %43 = vector.extract_strided_slice %24 {offsets = [0, 0], sizes = [16, 8], strides = [1, 1]} : vector<16x32xf32> to vector<16x8xf32>
    %44 = vector.shape_cast %43 : vector<16x8xf32> to vector<2x8x8xf32>
    %45 = vector.extract_strided_slice %24 {offsets = [0, 8], sizes = [16, 8], strides = [1, 1]} : vector<16x32xf32> to vector<16x8xf32>
    %46 = vector.shape_cast %45 : vector<16x8xf32> to vector<2x8x8xf32>
    %47 = vector.extract_strided_slice %24 {offsets = [0, 16], sizes = [16, 8], strides = [1, 1]} : vector<16x32xf32> to vector<16x8xf32>
    %48 = vector.shape_cast %47 : vector<16x8xf32> to vector<2x8x8xf32>
    %49 = vector.extract_strided_slice %24 {offsets = [0, 24], sizes = [16, 8], strides = [1, 1]} : vector<16x32xf32> to vector<16x8xf32>
    %50 = vector.shape_cast %49 : vector<16x8xf32> to vector<2x8x8xf32>
    %51 = tpu.concatenate %44, %46, %48, %50 in 0 : vector<2x8x8xf32>, vector<2x8x8xf32>, vector<2x8x8xf32>, vector<2x8x8xf32> -> vector<8x8x8xf32>
    "tpu.trace_start"() <{level = 10 : i32, message = "bqd,bkd->bqk"}> : () -> ()
    %cst_30 = arith.constant dense<0.000000e+00> : vector<8x8x8xf32>
    %52 = tpu.matmul %33, %42, %cst_30 {dimension_numbers = #tpu.dot_dimension_numbers<[2], [2], [1], [1], [0, 0, 0, 1, 1, 1], [0], [0]>} : vector<8x8x8xf32>, vector<8x8x8xf32>, vector<8x8x8xf32> -> vector<8x8x8xf32>
    "tpu.trace_stop"() : () -> ()
    %cst_31 = arith.constant dense<0xFF800000> : vector<8x8xf32>
    %53 = vector.multi_reduction <maximumf>, %52, %cst_31 [2] : vector<8x8x8xf32> to vector<8x8xf32>
    %54 = vector.shape_cast %53 : vector<8x8xf32> to vector<8x8x1xf32>
    %55 = vector.broadcast %54 : vector<8x8x1xf32> to vector<8x8x8xf32>
    %56 = arith.subf %52, %55 : vector<8x8x8xf32>
    %57 = math.exp %56 : vector<8x8x8xf32>
    %cst_32 = arith.constant dense<0.000000e+00> : vector<8x8xf32>
    %58 = vector.multi_reduction <add>, %57, %cst_32 [2] : vector<8x8x8xf32> to vector<8x8xf32>
    %59 = vector.shape_cast %58 : vector<8x8xf32> to vector<8x8x1xf32>
    %60 = tpu.reciprocal %59 {approx = true} : vector<8x8x1xf32> -> vector<8x8x1xf32>
    %61 = vector.broadcast %60 : vector<8x8x1xf32> to vector<8x8x8xf32>
    %62 = arith.mulf %57, %61 : vector<8x8x8xf32>
    "tpu.trace_start"() <{level = 10 : i32, message = "bqk,bkd->bqd"}> : () -> ()
    %cst_33 = arith.constant dense<0.000000e+00> : vector<8x8x8xf32>
    %63 = tpu.matmul %62, %51, %cst_33 {dimension_numbers = #tpu.dot_dimension_numbers<[2], [1], [1], [2], [0, 0, 0, 1, 1, 2], [0], [0]>} : vector<8x8x8xf32>, vector<8x8x8xf32>, vector<8x8x8xf32> -> vector<8x8x8xf32>
    "tpu.trace_stop"() : () -> ()
    %64 = vector.extract_strided_slice %63 {offsets = [0, 0, 0], sizes = [2, 8, 8], strides = [1, 1, 1]} : vector<8x8x8xf32> to vector<2x8x8xf32>
    %65 = vector.shape_cast %64 : vector<2x8x8xf32> to vector<16x8xf32>
    %66 = vector.extract_strided_slice %63 {offsets = [2, 0, 0], sizes = [2, 8, 8], strides = [1, 1, 1]} : vector<8x8x8xf32> to vector<2x8x8xf32>
    %67 = vector.shape_cast %66 : vector<2x8x8xf32> to vector<16x8xf32>
    %68 = vector.extract_strided_slice %63 {offsets = [4, 0, 0], sizes = [2, 8, 8], strides = [1, 1, 1]} : vector<8x8x8xf32> to vector<2x8x8xf32>
    %69 = vector.shape_cast %68 : vector<2x8x8xf32> to vector<16x8xf32>
    %70 = vector.extract_strided_slice %63 {offsets = [6, 0, 0], sizes = [2, 8, 8], strides = [1, 1, 1]} : vector<8x8x8xf32> to vector<2x8x8xf32>
    %71 = vector.shape_cast %70 : vector<2x8x8xf32> to vector<16x8xf32>
    %72 = tpu.concatenate %65, %67, %69, %71 in 1 : vector<16x8xf32>, vector<16x8xf32>, vector<16x8xf32>, vector<16x8xf32> -> vector<16x32xf32>
    %c0_34 = arith.constant 0 : index
    %c0_35 = arith.constant 0 : index
    %73 = vector.load %arg8[%c0_34, %c0_35] : memref<32x32xf32, #tpu.memory_space<vmem>>, vector<32x32xf32>
    %cst_36 = arith.constant dense<0.000000e+00> : vector<16x32xf32>
    %74 = tpu.matmul %72, %73, %cst_36 {dimension_numbers = #tpu.dot_dimension_numbers<[1], [0], [0], [1], [0, 0, 1, 1], [], []>} : vector<16x32xf32>, vector<32x32xf32>, vector<16x32xf32> -> vector<16x32xf32>
    %75 = vector.broadcast %3 : vector<1x32xf32> to vector<16x32xf32>
    %76 = arith.addf %74, %75 : vector<16x32xf32>
    %77 = arith.addf %10, %76 : vector<16x32xf32>
    %cst_37 = arith.constant dense<0.000000e+00> : vector<16xf32>
    %78 = vector.multi_reduction <add>, %77, %cst_37 [1] : vector<16x32xf32> to vector<16xf32>
    %79 = vector.shape_cast %78 : vector<16xf32> to vector<16x1xf32>
    %cst_38 = arith.constant 3.200000e+01 : f32
    %80 = vector.broadcast %cst_38 : f32 to vector<16x1xf32>
    %81 = arith.divf %79, %80 : vector<16x1xf32>
    %82 = vector.broadcast %81 : vector<16x1xf32> to vector<16x32xf32>
    %83 = arith.subf %77, %82 : vector<16x32xf32>
    %84 = arith.mulf %83, %83 : vector<16x32xf32>
    %cst_39 = arith.constant dense<0.000000e+00> : vector<16xf32>
    %85 = vector.multi_reduction <add>, %84, %cst_39 [1] : vector<16x32xf32> to vector<16xf32>
    %86 = vector.shape_cast %85 : vector<16xf32> to vector<16x1xf32>
    %cst_40 = arith.constant 3.200000e+01 : f32
    %87 = vector.broadcast %cst_40 : f32 to vector<16x1xf32>
    %88 = arith.divf %86, %87 : vector<16x1xf32>
    %89 = vector.broadcast %81 : vector<16x1xf32> to vector<16x32xf32>
    %90 = arith.subf %77, %89 : vector<16x32xf32>
    %cst_41 = arith.constant 9.99999974E-6 : f32
    %91 = vector.broadcast %cst_41 : f32 to vector<16x1xf32>
    %92 = arith.addf %88, %91 : vector<16x1xf32>
    %93 = math.rsqrt %92 : vector<16x1xf32>
    %94 = vector.broadcast %93 : vector<16x1xf32> to vector<16x32xf32>
    %95 = arith.mulf %90, %94 : vector<16x32xf32>
    %96 = vector.broadcast %6 : vector<1x32xf32> to vector<16x32xf32>
    %97 = arith.mulf %95, %96 : vector<16x32xf32>
    %98 = vector.broadcast %7 : vector<1x32xf32> to vector<16x32xf32>
    %99 = arith.addf %97, %98 : vector<16x32xf32>
    %c0_42 = arith.constant 0 : index
    %c0_43 = arith.constant 0 : index
    %100 = vector.load %arg12[%c0_42, %c0_43] : memref<32x64xf32, #tpu.memory_space<vmem>>, vector<32x64xf32>
    %cst_44 = arith.constant dense<0.000000e+00> : vector<16x64xf32>
    %101 = tpu.matmul %99, %100, %cst_44 {dimension_numbers = #tpu.dot_dimension_numbers<[1], [0], [0], [1], [0, 0, 1, 1], [], []>} : vector<16x32xf32>, vector<32x64xf32>, vector<16x64xf32> -> vector<16x64xf32>
    %102 = vector.broadcast %4 : vector<1x64xf32> to vector<16x64xf32>
    %103 = arith.addf %101, %102 : vector<16x64xf32>
    %cst_45 = arith.constant 0.000000e+00 : f32
    %104 = vector.broadcast %cst_45 : f32 to vector<16x64xf32>
    %105 = arith.maximumf %103, %104 : vector<16x64xf32>
    %c0_46 = arith.constant 0 : index
    %c0_47 = arith.constant 0 : index
    %106 = vector.load %arg14[%c0_46, %c0_47] : memref<64x32xf32, #tpu.memory_space<vmem>>, vector<64x32xf32>
    %cst_48 = arith.constant dense<0.000000e+00> : vector<16x32xf32>
    %107 = tpu.matmul %105, %106, %cst_48 {dimension_numbers = #tpu.dot_dimension_numbers<[1], [0], [0], [1], [0, 0, 1, 1], [], []>} : vector<16x64xf32>, vector<64x32xf32>, vector<16x32xf32> -> vector<16x32xf32>
    %108 = vector.broadcast %5 : vector<1x32xf32> to vector<16x32xf32>
    %109 = arith.addf %107, %108 : vector<16x32xf32>
    %110 = arith.addf %109, %99 : vector<16x32xf32>
    %cst_49 = arith.constant dense<0.000000e+00> : vector<16xf32>
    %111 = vector.multi_reduction <add>, %110, %cst_49 [1] : vector<16x32xf32> to vector<16xf32>
    %112 = vector.shape_cast %111 : vector<16xf32> to vector<16x1xf32>
    %cst_50 = arith.constant 3.200000e+01 : f32
    %113 = vector.broadcast %cst_50 : f32 to vector<16x1xf32>
    %114 = arith.divf %112, %113 : vector<16x1xf32>
    %115 = vector.broadcast %114 : vector<16x1xf32> to vector<16x32xf32>
    %116 = arith.subf %110, %115 : vector<16x32xf32>
    %117 = arith.mulf %116, %116 : vector<16x32xf32>
    %cst_51 = arith.constant dense<0.000000e+00> : vector<16xf32>
    %118 = vector.multi_reduction <add>, %117, %cst_51 [1] : vector<16x32xf32> to vector<16xf32>
    %119 = vector.shape_cast %118 : vector<16xf32> to vector<16x1xf32>
    %cst_52 = arith.constant 3.200000e+01 : f32
    %120 = vector.broadcast %cst_52 : f32 to vector<16x1xf32>
    %121 = arith.divf %119, %120 : vector<16x1xf32>
    %122 = vector.broadcast %114 : vector<16x1xf32> to vector<16x32xf32>
    %123 = arith.subf %110, %122 : vector<16x32xf32>
    %cst_53 = arith.constant 9.99999974E-6 : f32
    %124 = vector.broadcast %cst_53 : f32 to vector<16x1xf32>
    %125 = arith.addf %121, %124 : vector<16x1xf32>
    %126 = math.rsqrt %125 : vector<16x1xf32>
    %127 = vector.broadcast %126 : vector<16x1xf32> to vector<16x32xf32>
    %128 = arith.mulf %123, %127 : vector<16x32xf32>
    %129 = vector.broadcast %8 : vector<1x32xf32> to vector<16x32xf32>
    %130 = arith.mulf %128, %129 : vector<16x32xf32>
    %131 = vector.broadcast %9 : vector<1x32xf32> to vector<16x32xf32>
    %132 = arith.addf %130, %131 : vector<16x32xf32>
    %c0_54 = arith.constant 0 : index
    %c0_55 = arith.constant 0 : index
    %133 = vector.load %arg18[%c0_54, %c0_55] : memref<16x32xf32, #tpu.memory_space<vmem>>, vector<16x32xf32>
    tpu.vector_store %arg18[%c0_54, %c0_55], %132 {strides = array<i32>} : memref<16x32xf32, #tpu.memory_space<vmem>>, vector<16x32xf32>,
    return
  }
  func.func @transform_0(%arg0: i32) -> (i32, i32) {
    %c0_i32 = arith.constant 0 : i32
    %c0_i32_0 = arith.constant 0 : i32
    return %arg0, %c0_i32 : i32, i32
  }
  func.func @transform_1(%arg0: i32) -> (i32, i32) {
    %c0_i32 = arith.constant 0 : i32
    %c0_i32_0 = arith.constant 0 : i32
    %c0_i32_1 = arith.constant 0 : i32
    return %c0_i32, %c0_i32_0 : i32, i32
  }
  func.func @transform_2(%arg0: i32) -> (i32, i32) {
    %c0_i32 = arith.constant 0 : i32
    %c0_i32_0 = arith.constant 0 : i32
    %c0_i32_1 = arith.constant 0 : i32
    return %c0_i32, %c0_i32_0 : i32, i32
  }
  func.func @transform_3(%arg0: i32) -> (i32, i32) {
    %c0_i32 = arith.constant 0 : i32
    %c0_i32_0 = arith.constant 0 : i32
    %c0_i32_1 = arith.constant 0 : i32
    return %c0_i32, %c0_i32_0 : i32, i32
  }
  func.func @transform_4(%arg0: i32) -> (i32, i32) {
    %c0_i32 = arith.constant 0 : i32
    %c0_i32_0 = arith.constant 0 : i32
    %c0_i32_1 = arith.constant 0 : i32
    return %c0_i32, %c0_i32_0 : i32, i32
  }
  func.func @transform_5(%arg0: i32) -> (i32, i32) {
    %c0_i32 = arith.constant 0 : i32
    %c0_i32_0 = arith.constant 0 : i32
    %c0_i32_1 = arith.constant 0 : i32
    return %c0_i32, %c0_i32_0 : i32, i32
  }
  func.func @transform_6(%arg0: i32) -> (i32, i32) {
    %c0_i32 = arith.constant 0 : i32
    %c0_i32_0 = arith.constant 0 : i32
    %c0_i32_1 = arith.constant 0 : i32
    return %c0_i32, %c0_i32_0 : i32, i32
  }
  func.func @transform_7(%arg0: i32) -> (i32, i32) {
    %c0_i32 = arith.constant 0 : i32
    %c0_i32_0 = arith.constant 0 : i32
    %c0_i32_1 = arith.constant 0 : i32
    return %c0_i32, %c0_i32_0 : i32, i32
  }
  func.func @transform_8(%arg0: i32) -> (i32, i32) {
    %c0_i32 = arith.constant 0 : i32
    %c0_i32_0 = arith.constant 0 : i32
    %c0_i32_1 = arith.constant 0 : i32
    return %c0_i32, %c0_i32_0 : i32, i32
  }
  func.func @transform_9(%arg0: i32) -> (i32, i32) {
    %c0_i32 = arith.constant 0 : i32
    %c0_i32_0 = arith.constant 0 : i32
    %c0_i32_1 = arith.constant 0 : i32
    return %c0_i32, %c0_i32_0 : i32, i32
  }
  func.func @transform_10(%arg0: i32) -> (i32, i32) {
    %c0_i32 = arith.constant 0 : i32
    %c0_i32_0 = arith.constant 0 : i32
    %c0_i32_1 = arith.constant 0 : i32
    return %c0_i32, %c0_i32_0 : i32, i32
  }
  func.func @transform_11(%arg0: i32) -> (i32, i32) {
    %c0_i32 = arith.constant 0 : i32
    %c0_i32_0 = arith.constant 0 : i32
    %c0_i32_1 = arith.constant 0 : i32
    return %c0_i32, %c0_i32_0 : i32, i32
  }
  func.func @transform_12(%arg0: i32) -> (i32, i32) {
    %c0_i32 = arith.constant 0 : i32
    %c0_i32_0 = arith.constant 0 : i32
    %c0_i32_1 = arith.constant 0 : i32
    return %c0_i32, %c0_i32_0 : i32, i32
  }
  func.func @transform_13(%arg0: i32) -> (i32, i32) {
    %c0_i32 = arith.constant 0 : i32
    %c0_i32_0 = arith.constant 0 : i32
    %c0_i32_1 = arith.constant 0 : i32
    return %c0_i32, %c0_i32_0 : i32, i32
  }
  func.func @transform_14(%arg0: i32) -> (i32, i32) {
    %c0_i32 = arith.constant 0 : i32
    %c0_i32_0 = arith.constant 0 : i32
    %c0_i32_1 = arith.constant 0 : i32
    return %c0_i32, %c0_i32_0 : i32, i32
  }
  func.func @transform_15(%arg0: i32) -> (i32, i32) {
    %c0_i32 = arith.constant 0 : i32
    %c0_i32_0 = arith.constant 0 : i32
    %c0_i32_1 = arith.constant 0 : i32
    return %c0_i32, %c0_i32_0 : i32, i32
  }
  func.func @transform_16(%arg0: i32) -> (i32, i32) {
    %c0_i32 = arith.constant 0 : i32
    %c0_i32_0 = arith.constant 0 : i32
    %c0_i32_1 = arith.constant 0 : i32
    return %c0_i32, %c0_i32_0 : i32, i32
  }
  func.func @transform_17(%arg0: i32) -> (i32, i32) {
    %c0_i32 = arith.constant 0 : i32
    %c0_i32_0 = arith.constant 0 : i32
    return %arg0, %c0_i32 : i32, i32
  }
}

</mosaic_0001>

<bundles_post_ra>
// kernel: tpu_custom_call.1
= control target key start
LH: loop header
LB: loop body
LE: loop exit
PB: predicated region body
PF: predicated region fallthrough
CT: control target
= control target key end

     0   :  { %s1552_s0 = inlined_call_operand.hbm [shape: f32[16,32], index: 0, kind: input, shape index: {}]   ;;  %s1553_s1 = inlined_call_operand.vmem [shape: f32[32,32], index: 1, kind: input, shape index: {}]   ;;  %s1554_s2 = inlined_call_operand.vmem [shape: f32[32,32], index: 2, kind: input, shape index: {}]   ;;  %s1555_s3 = inlined_call_operand.vmem [shape: f32[32,32], index: 3, kind: input, shape index: {}]   ;;  %s1556_s4 = inlined_call_operand.vmem [shape: f32[1,32], index: 4, kind: input, shape index: {}]   ;;  %s1557_s5 = inlined_call_operand.vmem [shape: f32[1,32], index: 5, kind: input, shape index: {}]   ;;  %s1558_s6 = inlined_call_operand.vmem [shape: f32[1,32], index: 6, kind: input, shape index: {}]   ;;  %s1559_s7 = inlined_call_operand.hbm [shape: f32[32,32], index: 7, kind: input, shape index: {}]   ;;  %s1560_s8 = inlined_call_operand.vmem [shape: f32[1,32], index: 8, kind: input, shape index: {}]   ;;  %s1561_s9 = inlined_call_operand.vmem [shape: f32[1,32], index: 9, kind: input, shape index: {}]   ;;  %s1562_s10 = inlined_call_operand.vmem [shape: f32[1,32], index: 10, kind: input, shape index: {}]   ;;  %s1563_s11 = inlined_call_operand.hbm [shape: f32[32,64], index: 11, kind: input, shape index: {}]   ;;  %s1564_s12 = inlined_call_operand.vmem [shape: f32[1,64], index: 12, kind: input, shape index: {}]   ;;  %s1565_s13 = inlined_call_operand.vmem [shape: f32[64,32], index: 13, kind: input, shape index: {}]   ;;  %s1566_s14 = inlined_call_operand.vmem [shape: f32[1,32], index: 14, kind: input, shape index: {}]   ;;  %s1567_s15 = inlined_call_operand.vmem [shape: f32[1,32], index: 15, kind: input, shape index: {}]   ;;  %s1568_s16 = inlined_call_operand.vmem [shape: f32[1,32], index: 16, kind: input, shape index: {}]   ;;  %s1569_s17 = inlined_call_operand.hbm [shape: f32[16,32], index: 17, kind: output, shape index: {}]  }
   0x1   :  { %1571 = sst [smem:[#allocation12_spill]] %s1552_s0 }
   0x2   :  { %1572 = sst [smem:[#allocation13_spill]] %s1553_s1 }
   0x3   :  { %22 = vsyncpa [#allocation3], 0 }
   0x4   :  { %23 = vsyncpa [#allocation6], 0 }
   0x5   :  { %24 = vsyncpa [#allocation4], 0  ;;  %s54_s26 = sshll.u32 %s1559_s7, 4  ;;  %s1223_s27 = smov [#allocation5]   ;;  %s55_s26 = int_to_ptr.hbm [resolvable:$true] %s54_s26 }
   0x6   :  { %s56_s28 = sshll.u32 %s1223_s27, 4  ;;  %s1573_s30 = sld [smem:[#allocation12_spill]]  ;;  %s57_s28 = int_to_ptr.vmem [resolvable:$true] %s56_s28 }
   0x7   :  { %s1224_s19 = smov 128   ;;  %s1225_s1 = smov 8  }
   0x8   :  { %62 = dma.hbm_to_vmem [thread:$0]  %s55_s26, 512, %s57_s28, [#allocation6], %s1224_s19, %s1224_s19, %s1225_s1  }
   0x9   :  { %s1226_s20 = smov [#allocation2]   ;;  %s73_s7 = sshll.u32 %s1563_s11, 4  ;;  %s74_s7 = int_to_ptr.hbm [resolvable:$true] %s73_s7 }
   0xa   :  { %s31_s21 = sshll.u32 %s1226_s20, 4  ;;  %s1227_s24 = smov [#allocation7]   ;;  %s32_s21 = int_to_ptr.vmem [resolvable:$true] %s31_s21 }
   0xb   :  { %s75_s25 = sshll.u32 %s1227_s24, 4  ;;  %s76_s25 = int_to_ptr.vmem [resolvable:$true] %s75_s25 }
   0xc   :  { %s29_s18 = sshll.u32 %s1573_s30, 4  ;;  %s30_s18 = int_to_ptr.hbm [resolvable:$true] %s29_s18 }
   0xd   :  { %37 = dma.hbm_to_vmem [thread:$0]  %s30_s18, 256, %s32_s21, [#allocation3], %s1224_s19, %s1224_s19, %s1225_s1  }
   0xe   :  { %81 = dma.hbm_to_vmem [thread:$0]  %s74_s7, 512, %s76_s25, [#allocation6], %s1224_s19, %s1224_s19, %s1225_s1  }
   0xf   :  { %1217 = dma.done.wait [#allocation3], 256  }
  0x10   :  { %1218 = vsyncadd [#allocation3], 4294967040 }
  0x11   :  { %1219 = dma.done.wait [#allocation6], 1024  }
  0x12   :  { %1220 = vsyncadd [#allocation6], 4294966272  ;;  %v158_v0 = vld [vmem:[%s1554_s2 + $0x18] sm:$0xff]  ;;  %s1574_s29 = sld [smem:[#allocation13_spill]]  ;;  %v157_v2 = vld [vmem:[%s1554_s2 + $0x10] sm:$0xff]  ;;  %vm123_vm0 = vcmask 261120  }
  0x13   :  { %174 = vmatpush.msra.mxu1 %v158_v0  ;;  %v156_v4 = vld [vmem:[%s1554_s2 + $0x8] sm:$0xff]  ;;  %v155_v6 = vld [vmem:[%s1554_s2] sm:$0xff]  ;;  %vm263_vm1 = vcmask 64512   ;;  %s1228_s0 = smov 104   ;;  %s1229_s30 = smov 120   ;;  %v188_v22 = vld [vmem:[%s1555_s3 + $0x18] sm:$0xff] }
  0x14   :  { %v1367_v8 = vld [vmem:[#allocation2] sm:$0xff]  ;;  %v1373_v9 = vld [vmem:[#allocation2 + $0x8] sm:$0xff]  ;;  %204 = vmatpush.msra.mxu2 %v188_v22  ;;  %v187_v23 = vld [vmem:[%s1555_s3 + $0x10] sm:$0xff]  ;;  %s1232_s26 = smov 24   ;;  %vm754_vm2 = vcmask 130048   ;;  %vm757_vm3 = vcmask 195584  }
  0x15   :  { %175 = vmatpush.msra.mxu1 %v157_v2  ;;  %v1069_v10 = vld [vmem:[%s1557_s5] ss:$0 sm:$0xff]  ;;  %v186_v24 = vld [vmem:[%s1555_s3 + $0x8] sm:$0xff]  ;;  %vm908_vm11 = vcmask 523264  }
  0x16   :  { %v1070_v11 = vld [vmem:[%s1556_s4] ss:$0 sm:$0xff]  ;;  %s1230_s4 = smov 112   ;;  %205 = vmatpush.msra.mxu2 %v187_v23 }
  0x17   :  { %176 = vmatpush.msra.mxu1 %v156_v4  ;;  %v185_v25 = vld [vmem:[%s1555_s3] sm:$0xff] }
  0x18   :  { %v119_v1 = vld [vmem:[%s1574_s29 + $0x18] sm:$0xff]  ;;  %v118_v3 = vld [vmem:[%s1574_s29 + $0x10] sm:$0xff]  ;;  %v117_v5 = vld [vmem:[%s1574_s29 + $0x8] sm:$0xff]  ;;  %206 = vmatpush.msra.mxu2 %v186_v24 }
  0x19   :  { %142 = vmatpush.msra.mxu0 %v119_v1  ;;  %v116_v7 = vld [vmem:[%s1574_s29] sm:$0xff]  ;;  %177 = vmatpush.msra.mxu1 %v155_v6 }
  0x1a   :  { %1018 = vmatmul.msk.f32.vlgmr.msra.gmra.mxu1 %vm123_vm0, %v1367_v8  ;;  %207 = vmatpush.msra.mxu2 %v185_v25  ;;  %v1071_v42 = vld [vmem:[%s1558_s6] ss:$0 sm:$0xff]  ;;  %s1231_s6 = smov 16  }
  0x1b   :  { %143 = vmatpush.msra.mxu0 %v118_v3  ;;  %1020 = vmatmul.msk.f32.vlgmr.msra.gmra.mxu2 %vm123_vm0, %v1367_v8 }
  0x1d   :  { %144 = vmatpush.msra.mxu0 %v117_v5 }
  0x1f   :  { %145 = vmatpush.msra.mxu0 %v116_v7 }
  0x20   :  { %1016 = vmatmul.msk.f32.vlgmr.msra.gmra.mxu0 %vm123_vm0, %v1367_v8 }
  0x22   :  { %1019 = vmatmul.msk.f32.gmra.mxu1 %vm123_vm0, %v1373_v9 }
  0x23   :  { %1021 = vmatmul.msk.f32.gmra.mxu2 %vm123_vm0, %v1373_v9 }
  0x28   :  { %1017 = vmatmul.msk.f32.gmra.mxu0 %vm123_vm0, %v1373_v9 }
  0x97   :  { %v179_v12 = vpop.f32.mrf.mxu1 }
  0x98   :  { %v180_v14 = vadd.f32 %v1069_v10, %v179_v12 }
  0x9a   :  { %239 = vrot.lane.b32.xlu1 %v180_v14, %s1228_s0  ;;  %231 = vrot.lane.b32.xlu0 %v180_v14, %s1229_s30 }
  0x9b   :  { %1022 = vmatpush.xpose.msk.msrb.mxu0 %vm263_vm1, %v180_v14 }
  0x9d   :  { %v147_v13 = vpop.f32.mrf.mxu0 }
  0x9e   :  { %v148_v15 = vadd.f32 %v1070_v11, %v147_v13  ;;  %v209_v43 = vpop.f32.mrf.mxu2 }
  0x9f   :  { %v182_v17 = vpop.f32.mrf.mxu1  ;;  %v210_v44 = vadd.f32 %v1071_v42, %v209_v43 }
  0xa0   :  { %v153_v16 = vmul.f32 0.35355338, %v148_v15  ;;  %v183_v19 = vadd.f32 %v1069_v10, %v182_v17 }
  0xa2   :  { %1023 = vmatmul.msk.f32.vlgmr.msrb.gmra.mxu0 %vm263_vm1, %v153_v16  ;;  %237 = vrot.lane.b32.xlu2 %v183_v19, %s1230_s4 }
  0xa3   :  { %1024 = vmatpush.xpose.msk.msra.mxu3 %vm263_vm1, %v183_v19  ;;  %225 = vrot.lane.b32.xlu1 %v153_v16, %s1228_s0 }
  0xa4   :  { %217 = vrot.lane.b32.xlu0 %v153_v16, %s1229_s30 }
  0xa5   :  { %v150_v18 = vpop.f32.mrf.mxu0 }
  0xa6   :  { %v151_v20 = vadd.f32 %v1070_v11, %v150_v18  ;;  %v212_v45 = vpop.f32.mrf.mxu2 }
  0xa7   :  { %v1434_v46 = vadd.f32 %v1071_v42, %v212_v45 }
  0xa8   :  { %v154_v21 = vmul.f32 0.35355338, %v151_v20 }
  0xa9   :  { %v1064_v62 = vpack.i.bf16 %v1434_v46, %v210_v44 }
  0xaa   :  { %1025 = vmatmul.msk.f32.vlgmr.msra.gmra.mxu3 %vm263_vm1, %v154_v21  ;;  %223 = vrot.lane.b32.xlu2 %v154_v21, %s1230_s4 }
  0xab   :  { %233 = vrot.lane.b32.xlu1 %v183_v19, %s1229_s30 }
  0xac   :  { %235 = vrot.lane.b32.xlu0 %v180_v14, %s1230_s4 }
  0xb2   :  { %221 = vrot.lane.b32.xlu2 %v153_v16, %s1230_s4 }
  0xb3   :  { %241 = vrot.lane.b32.xlu1 %v183_v19, %s1228_s0 }
  0xb4   :  { %219 = vrot.lane.b32.xlu0 %v154_v21, %s1229_s30 }
  0xba   :  { %227 = vrot.lane.b32.xlu2 %v154_v21, %s1228_s0 }
  0xfc   :  { %v238_v26 = vpop.permute.xlu2 %237 }
  0xfd   :  { %1032 = vmatpush.xpose.msk.msrb.mxu2 %vm263_vm1, %v238_v26 }
 0x101   :  { %585 = vmatpush.msra.mxu2 %v1434_v46 }
 0x104   :  { %v224_v27 = vpop.permute.xlu2 %223 }
 0x105   :  { %1033 = vmatmul.msk.f32.vlgmr.msrb.gmra.mxu2 %vm263_vm1, %v224_v27 }
 0x10c   :  { %v240_v28 = vpop.permute.xlu1 %239  ;;  %v232_v29 = vpop.permute.xlu0 %231 }
 0x10d   :  { %1026 = vmatpush.xpose.msk.msrb.mxu3 %vm263_vm1, %v232_v29  ;;  %v222_v36 = vpop.permute.xlu2 %221 }
 0x111   :  { %1034 = vmatpush.xpose.msk.msra.mxu3 %vm263_vm1, %v240_v28 }
 0x115   :  { %v226_v30 = vpop.permute.xlu1 %225  ;;  %v228_v41 = vpop.permute.xlu2 %227 }
 0x116   :  { %v218_v31 = vpop.permute.xlu0 %217 }
 0x117   :  { %1027 = vmatmul.msk.f32.vlgmr.msrb.gmra.mxu3 %vm263_vm1, %v218_v31 }
 0x11d   :  { %v234_v35 = vpop.permute.xlu1 %233 }
 0x11e   :  { %v236_v34 = vpop.permute.xlu0 %235  ;;  %1028 = vmatpush.xpose.msk.msra.mxu0 %vm263_vm1, %v234_v35 }
 0x11f   :  { %v285_v32 = vpop.f32.mrf.mxu0  ;;  %1030 = vmatpush.xpose.msk.msrb.mxu1 %vm263_vm1, %v236_v34  ;;  %1035 = vmatmul.msk.f32.vlgmr.msra.gmra.mxu3 %vm263_vm1, %v226_v30 }
 0x120   :  { %v456_v33 = vsel %vm263_vm1, %v285_v32, -inf }
 0x121   :  { %457 = vmax.xlane.f32.xlu1 %v456_v33 }
 0x122   :  { %1031 = vmatmul.msk.f32.vlgmr.msrb.gmra.mxu1 %vm263_vm1, %v222_v36 }
 0x123   :  { %562 = vmatpush.msra.mxu1 %v210_v44 }
 0x125   :  { %v242_v38 = vpop.permute.xlu1 %241 }
 0x126   :  { %v220_v37 = vpop.permute.xlu0 %219  ;;  %1036 = vmatpush.xpose.msk.msrb.mxu0 %vm263_vm1, %v242_v38 }
 0x127   :  { %1029 = vmatmul.msk.f32.vlgmr.msra.gmra.mxu0 %vm263_vm1, %v220_v37 }
 0x12d   :  { %v309_v39 = vpop.f32.mrf.mxu3 }
 0x12e   :  { %v459_v40 = vsel %vm263_vm1, %v309_v39, -inf }
 0x12f   :  { %460 = vmax.xlane.f32.xlu2 %v459_v40  ;;  %1037 = vmatmul.msk.f32.vlgmr.msrb.gmra.mxu0 %vm263_vm1, %v228_v41 }
 0x188   :  { %v405_v60 = vpop.f32.mrf.mxu2 }
 0x189   :  { %v471_v61 = vsel %vm263_vm1, %v405_v60, -inf }
 0x194   :  { %v458_v47 = vpop.xlane.xlu1 %457 }
 0x195   :  { %v480_v48 = vsub.f32 %v285_v32, %v458_v47 }
 0x197   :  { %v488_v49 = vmul.f32 1.442695, %v480_v48 }
 0x199   :  { %1079 = vpow2.f32 %v488_v49 }
 0x19a   :  { %v333_v50 = vpop.f32.mrf.mxu3 }
 0x19b   :  { %v462_v59 = vsel %vm263_vm1, %v333_v50, -inf }
 0x19f   :  { %v1080_v51 = vpop.eup %1079  ;;  %v381_v53 = vpop.f32.mrf.mxu1 }
 0x1a0   :  { %v504_v52 = vsel %vm263_vm1, %v1080_v51, 0.0  ;;  %v468_v54 = vsel %vm263_vm1, %v381_v53, -inf }
 0x1a1   :  { %505 = vadd.xlane.f32.xlu2 %v504_v52  ;;  %469 = vmax.xlane.f32.xlu0 %v468_v54 }
 0x1a2   :  { %v429_v55 = vpop.f32.mrf.mxu3  ;;  %v461_v63 = vpop.xlane.xlu2 %460 }
 0x1a3   :  { %v474_v57 = vsel %vm263_vm1, %v429_v55, -inf  ;;  %v481_v0 = vsub.f32 %v309_v39, %v461_v63 }
 0x1a4   :  { %v357_v56 = vpop.f32.mrf.mxu0 }
 0x1a5   :  { %v465_v58 = vsel %vm263_vm1, %v357_v56, -inf  ;;  %v490_v1 = vmul.f32 1.442695, %v481_v0 }
 0x1a6   :  { %466 = vmax.xlane.f32.xlu1 %v465_v58 }
 0x1a7   :  { %1081 = vpow2.f32 %v490_v1 }
 0x1a9   :  { %475 = vmax.xlane.f32.xlu2 %v474_v57  ;;  %463 = vmax.xlane.f32.xlu0 %v462_v59 }
 0x1ac   :  { %v453_v2 = vpop.f32.mrf.mxu0 }
 0x1ad   :  { %v477_v3 = vsel %vm263_vm1, %v453_v2, -inf  ;;  %v1448_v4 = vpop.eup %1081 }
 0x1ae   :  { %v507_v5 = vsel %vm263_vm1, %v1448_v4, 0.0 }
 0x1b1   :  { %472 = vmax.xlane.f32.xlu2 %v471_v61 }
 0x1bd   :  { %1065 = vrot.lane.b32.xlu0 %v1064_v62, %s1230_s4 }
 0x1bf   :  { %257 = vrot.lane.b32.xlu1 %v210_v44, %s1228_s0 }
 0x1c9   :  { %245 = vrot.lane.b32.xlu2 %v210_v44, %s1229_s30 }
 0x1e7   :  { %478 = vmax.xlane.f32.xlu0 %v477_v3 }
 0x1ef   :  { %508 = vadd.xlane.f32.xlu0 %v507_v5 }
 0x214   :  { %v506_v6 = vpop.xlane.xlu2 %505  ;;  %v470_v7 = vpop.xlane.xlu0 %469 }
 0x215   :  { %1083 = vrcp.f32 %v506_v6  ;;  %v484_v10 = vsub.f32 %v381_v53, %v470_v7 }
 0x217   :  { %v496_v11 = vmul.f32 1.442695, %v484_v10 }
 0x219   :  { %1085 = vpow2.f32 %v496_v11  ;;  %v467_v15 = vpop.xlane.xlu1 %466 }
 0x21a   :  { %v483_v19 = vsub.f32 %v357_v56, %v467_v15  ;;  %v763_v15 = vld [vmem:[#allocation5 + $0x18] sm:$0xff] }
 0x21b   :  { %v1084_v12 = vpop.eup %1083 }
 0x21c   :  { %v536_v13 = vmul.f32 %v1084_v12, %v1080_v51  ;;  %v476_v14 = vpop.xlane.xlu2 %475  ;;  %v464_v16 = vpop.xlane.xlu0 %463  ;;  %v494_v24 = vmul.f32 1.442695, %v483_v19 }
 0x21d   :  { %v482_v17 = vsub.f32 %v333_v50, %v464_v16  ;;  %v486_v27 = vsub.f32 %v429_v55, %v476_v14  ;;  %v762_v16 = vld [vmem:[#allocation5 + $0x10] sm:$0xff] }
 0x21e   :  { %1038 = vmatmul.msk.f32.vlgmr.msra.gmra.mxu1 %vm263_vm1, %v536_v13 }
 0x21f   :  { %v1086_v18 = vpop.eup %1085  ;;  %v492_v20 = vmul.f32 1.442695, %v482_v17  ;;  %v500_v30 = vmul.f32 1.442695, %v486_v27  ;;  %v761_v17 = vld [vmem:[#allocation5 + $0x8] sm:$0xff] }
 0x220   :  { %v516_v21 = vsel %vm263_vm1, %v1086_v18, 0.0 }
 0x221   :  { %1087 = vpow2.f32 %v492_v20  ;;  %517 = vadd.xlane.f32.xlu0 %v516_v21 }
 0x224   :  { %v473_v22 = vpop.xlane.xlu2 %472 }
 0x225   :  { %v485_v23 = vsub.f32 %v405_v60, %v473_v22 }
 0x227   :  { %v498_v25 = vmul.f32 1.442695, %v485_v23  ;;  %v1088_v26 = vpop.eup %1087 }
 0x228   :  { %v510_v28 = vsel %vm263_vm1, %v1088_v26, 0.0 }
 0x229   :  { %1089 = vpow2.f32 %v498_v25  ;;  %511 = vadd.xlane.f32.xlu1 %v510_v28 }
 0x22a   :  { %1091 = vpow2.f32 %v494_v24 }
 0x22b   :  { %1093 = vpow2.f32 %v500_v30 }
 0x22c   :  { %v246_v29 = vpop.permute.xlu2 %245 }
 0x22d   :  { %608 = vmatpush.msrb.mxu3 %v246_v29 }
 0x22f   :  { %v1090_v31 = vpop.eup %1089  ;;  %v1066_v34 = vpop.permute.xlu0 %1065 }
 0x230   :  { %v1092_v32 = vpop.eup %1091  ;;  %v519_v33 = vsel %vm263_vm1, %v1090_v31, 0.0  ;;  %v1068_v36 = vunpack.i.h.bf16 %v1066_v34  ;;  %v1067_v37 = vunpack.i.l.bf16 %v1066_v34 }
 0x231   :  { %520 = vadd.xlane.f32.xlu0 %v519_v33  ;;  %v513_v35 = vsel %vm263_vm1, %v1092_v32, 0.0  ;;  %v258_v38 = vpop.permute.xlu1 %257  ;;  %v1094_v39 = vpop.eup %1093 }
 0x232   :  { %514 = vadd.xlane.f32.xlu1 %v513_v35  ;;  %700 = vmatpush.msra.mxu3 %v258_v38  ;;  %v522_v40 = vsel %vm263_vm1, %v1094_v39, 0.0 }
 0x233   :  { %654 = vmatpush.msrb.mxu1 %v1067_v37  ;;  %677 = vmatpush.msrb.mxu2 %v1068_v36 }
 0x235   :  { %785 = vmatpush.msra.mxu1 %v763_v15 }
 0x237   :  { %786 = vmatpush.msra.mxu1 %v762_v16 }
 0x239   :  { %787 = vmatpush.msra.mxu1 %v761_v17  ;;  %v901_v17 = vld [vmem:[%s1565_s13 + $0x20] sm:$0xff] }
 0x23a   :  { %523 = vadd.xlane.f32.xlu1 %v522_v40  ;;  %v1233_v40 = vmov 32.0  }
 0x245   :  { %259 = vrot.lane.b32.xlu0 %v1434_v46, %s1228_s0  ;;  %s1002_s0 = sshll.u32 %s1569_s17, 4  ;;  %s1003_s0 = int_to_ptr.hbm [resolvable:$true] %s1002_s0 }
 0x253   :  { %247 = vrot.lane.b32.xlu1 %v1434_v46, %s1229_s30 }
 0x25a   :  { %v479_v41 = vpop.xlane.xlu0 %478 }
 0x25b   :  { %v487_v42 = vsub.f32 %v453_v2, %v479_v41 }
 0x25d   :  { %v502_v43 = vmul.f32 1.442695, %v487_v42 }
 0x25f   :  { %1095 = vpow2.f32 %v502_v43 }
 0x262   :  { %v509_v44 = vpop.xlane.xlu0 %508 }
 0x263   :  { %1097 = vrcp.f32 %v509_v44 }
 0x265   :  { %v1096_v45 = vpop.eup %1095 }
 0x266   :  { %v525_v47 = vsel %vm263_vm1, %v1096_v45, 0.0 }
 0x267   :  { %526 = vadd.xlane.f32.xlu2 %v525_v47 }
 0x269   :  { %v1098_v48 = vpop.eup %1097 }
 0x26a   :  { %v537_v49 = vmul.f32 %v1098_v48, %v1448_v4 }
 0x26c   :  { %1039 = vmatmul.msk.f32.vlgmr.msra.gmra.mxu2 %vm263_vm1, %v537_v49 }
 0x294   :  { %v518_v50 = vpop.xlane.xlu0 %517 }
 0x295   :  { %1099 = vrcp.f32 %v518_v50 }
 0x29b   :  { %v1100_v51 = vpop.eup %1099  ;;  %v564_v5 = vpop.f32.mrf.mxu1 }
 0x29c   :  { %v540_v52 = vmul.f32 %v1100_v51, %v1086_v18  ;;  %v512_v46 = vpop.xlane.xlu1 %511  ;;  %v760_v18 = vld [vmem:[#allocation5] sm:$0xff] }
 0x29d   :  { %1101 = vrcp.f32 %v512_v46  ;;  %788 = vmatpush.msra.mxu1 %v760_v18 }
 0x29e   :  { %1042 = vmatmul.msk.f32.vlgmr.msrb.gmra.mxu1 %vm263_vm1, %v540_v52 }
 0x2a3   :  { %v1102_v54 = vpop.eup %1101 }
 0x2a4   :  { %v521_v53 = vpop.xlane.xlu0 %520  ;;  %v538_v55 = vmul.f32 %v1102_v54, %v1088_v26 }
 0x2a5   :  { %1103 = vrcp.f32 %v521_v53  ;;  %v515_v56 = vpop.xlane.xlu1 %514 }
 0x2a6   :  { %1040 = vmatmul.msk.f32.vlgmr.msrb.gmra.mxu3 %vm263_vm1, %v538_v55  ;;  %v862_v55 = vld [vmem:[#allocation7 + $0x18] sm:$0xff] }
 0x2a7   :  { %884 = vmatpush.msra.mxu2 %v862_v55 }
 0x2ab   :  { %v1104_v57 = vpop.eup %1103 }
 0x2ac   :  { %v541_v58 = vmul.f32 %v1104_v57, %v1090_v31  ;;  %v1072_v31 = vld [vmem:[%s1560_s8] ss:$0 sm:$0xff]  ;;  %v860_v57 = vld [vmem:[#allocation7 + $0x8] sm:$0xff] }
 0x2ad   :  { %v524_v59 = vpop.xlane.xlu1 %523 }
 0x2ae   :  { %1043 = vmatmul.msk.f32.vlgmr.msrb.gmra.mxu2 %vm263_vm1, %v541_v58  ;;  %1105 = vrcp.f32 %v524_v59  ;;  %v859_v58 = vld [vmem:[#allocation7] sm:$0xff] }
 0x2af   :  { %1107 = vrcp.f32 %v515_v56  ;;  %v861_v56 = vld [vmem:[#allocation7 + $0x10] sm:$0xff] }
 0x2b0   :  { %885 = vmatpush.msra.mxu2 %v861_v56 }
 0x2b2   :  { %886 = vmatpush.msra.mxu2 %v860_v57 }
 0x2b4   :  { %v1106_v60 = vpop.eup %1105  ;;  %887 = vmatpush.msra.mxu2 %v859_v58 }
 0x2b5   :  { %v542_v61 = vmul.f32 %v1106_v60, %v1094_v39  ;;  %v1108_v62 = vpop.eup %1107 }
 0x2b6   :  { %v539_v63 = vmul.f32 %v1108_v62, %v1092_v32 }
 0x2b7   :  { %1044 = vmatmul.msk.f32.vlgmr.msra.gmra.mxu3 %vm263_vm1, %v542_v61  ;;  %v260_v1 = vpop.permute.xlu0 %259 }
 0x2c5   :  { %v248_v0 = vpop.permute.xlu1 %247 }
 0x2c6   :  { %631 = vmatpush.msra.mxu0 %v248_v0 }
 0x2c7   :  { %1041 = vmatmul.msk.f32.vlgmr.msra.gmra.mxu0 %vm263_vm1, %v539_v63 }
 0x2c8   :  { %723 = vmatpush.msrb.mxu0 %v260_v1 }
 0x2da   :  { %v527_v2 = vpop.xlane.xlu2 %526 }
 0x2db   :  { %1109 = vrcp.f32 %v527_v2 }
 0x2dc   :  { %1111 = vrcp.f32 %v1233_v40  ;;  %v1076_v40 = vld [vmem:[%s1566_s14] ss:$0 sm:$0xff] }
 0x2e1   :  { %v1110_v3 = vpop.eup %1109 }
 0x2e2   :  { %v543_v4 = vmul.f32 %v1110_v3, %v1096_v45  ;;  %v1112_v41 = vpop.eup %1111 }
 0x2e3   :  { %v805_v42 = vmul.f32 32.0, %v1112_v41  ;;  %vm809_vm4 = vweird.f32 %v1112_v41 }
 0x2e4   :  { %1045 = vmatmul.msk.f32.vlgmr.msrb.gmra.mxu0 %vm263_vm1, %v543_v4  ;;  %v1073_v4 = vld [vmem:[%s1561_s9] ss:$0 sm:$0xff] }
 0x2e5   :  { %v806_v43 = vsub.f32 1.0, %v805_v42 }
 0x2e7   :  { %v807_v44 = vmul.f32 %v1112_v41, %v806_v43 }
 0x2e9   :  { %v808_v45 = vadd.f32 %v1112_v41, %v807_v44 }
 0x2eb   :  { %v1484_v47 = vsel %vm809_vm4, %v1112_v41, %v808_v45 }
 0x2ef   :  { %v587_v10 = vpop.f32.mrf.mxu2 }
 0x31b   :  { %v656_v6 = vpop.f32.mrf.mxu1 }
 0x31c   :  { %738 = vrot.lane.b32.xlu0 %v656_v6, %s1231_s6 }
 0x329   :  { %v610_v7 = vpop.f32.mrf.mxu3 }
 0x32a   :  { %730 = vrot.lane.b32.xlu1 %v610_v7, %s1225_s1  ;;  %v1074_v7 = vld [vmem:[%s1562_s10] ss:$0 sm:$0xff] }
 0x331   :  { %v679_v12 = vpop.f32.mrf.mxu2 }
 0x33a   :  { %v702_v11 = vpop.f32.mrf.mxu3 }
 0x33b   :  { %746 = vrot.lane.b32.xlu1 %v702_v11, %s1232_s26 }
 0x343   :  { %740 = vrot.lane.b32.xlu1 %v679_v12, %s1231_s6  ;;  %v904_v12 = vld [vmem:[%s1565_s13 + $0x38] sm:$0xff] }
 0x344   :  { %v633_v13 = vpop.f32.mrf.mxu0  ;;  %923 = vmatpush.msrb.mxu3 %v904_v12 }
 0x345   :  { %732 = vrot.lane.b32.xlu0 %v633_v13, %s1225_s1  ;;  %v903_v13 = vld [vmem:[%s1565_s13 + $0x30] sm:$0xff] }
 0x346   :  { %924 = vmatpush.msrb.mxu3 %v903_v13 }
 0x361   :  { %v725_v14 = vpop.f32.mrf.mxu0 }
 0x362   :  { %748 = vrot.lane.b32.xlu0 %v725_v14, %s1232_s26  ;;  %v902_v14 = vld [vmem:[%s1565_s13 + $0x28] sm:$0xff] }
 0x363   :  { %925 = vmatpush.msrb.mxu3 %v902_v14 }
 0x365   :  { %926 = vmatpush.msrb.mxu3 %v901_v17 }
 0x38e   :  { %v739_v21 = vpop.permute.xlu0 %738 }
 0x39c   :  { %v731_v19 = vpop.permute.xlu1 %730 }
 0x39d   :  { %v752_v20 = vsel %vm263_vm1, %v564_v5, %v731_v19  ;;  %v900_v19 = vld [vmem:[%s1565_s13 + $0x18] sm:$0xff] }
 0x39e   :  { %v755_v23 = vsel %vm754_vm2, %v752_v20, %v739_v21  ;;  %927 = vmatpush.msrb.mxu3 %v900_v19 }
 0x3ad   :  { %v747_v22 = vpop.permute.xlu1 %746 }
 0x3ae   :  { %v758_v24 = vsel %vm757_vm3, %v755_v23, %v747_v22 }
 0x3af   :  { %1046 = vmatmul.msk.f32.vlgmr.msra.gmra.mxu1 %vm123_vm0, %v758_v24 }
 0x3b5   :  { %v741_v27 = vpop.permute.xlu1 %740 }
 0x3b7   :  { %v733_v25 = vpop.permute.xlu0 %732 }
 0x3b8   :  { %v753_v26 = vsel %vm263_vm1, %v587_v10, %v733_v25 }
 0x3b9   :  { %v756_v29 = vsel %vm754_vm2, %v753_v26, %v741_v27 }
 0x3d4   :  { %v749_v28 = vpop.permute.xlu0 %748 }
 0x3d5   :  { %v759_v30 = vsel %vm757_vm3, %v756_v29, %v749_v28 }
 0x3d6   :  { %1047 = vmatmul.msk.f32.gmra.mxu1 %vm123_vm0, %v759_v30  ;;  %v899_v30 = vld [vmem:[%s1565_s13 + $0x10] sm:$0xff] }
 0x3d7   :  { %928 = vmatpush.msrb.mxu3 %v899_v30 }
 0x42c   :  { %v790_v32 = vpop.f32.mrf.mxu1 }
 0x42d   :  { %v791_v33 = vadd.f32 %v1072_v31, %v790_v32  ;;  %v897_v32 = vld [vmem:[%s1565_s13] sm:$0xff] }
 0x42f   :  { %v796_v34 = vadd.f32 %v791_v33, %v1367_v8  ;;  %v1075_v33 = vld [vmem:[%s1564_s12] ss:$0 sm:$0xff] }
 0x431   :  { %v798_v35 = vsel %vm123_vm0, %v796_v34, 0.0 }
 0x432   :  { %799 = vadd.xlane.f32.xlu2 %v798_v35 }
 0x453   :  { %v793_v36 = vpop.f32.mrf.mxu1 }
 0x454   :  { %v794_v37 = vadd.f32 %v1072_v31, %v793_v36  ;;  %v898_v31 = vld [vmem:[%s1565_s13 + $0x8] sm:$0xff] }
 0x455   :  { %929 = vmatpush.msrb.mxu3 %v898_v31 }
 0x456   :  { %v797_v38 = vadd.f32 %v794_v37, %v1373_v9 }
 0x457   :  { %930 = vmatpush.msrb.mxu3 %v897_v32 }
 0x458   :  { %v801_v39 = vsel %vm123_vm0, %v797_v38, 0.0 }
 0x459   :  { %802 = vadd.xlane.f32.xlu1 %v801_v39 }
 0x4a5   :  { %v800_v8 = vpop.xlane.xlu2 %799 }
 0x4a6   :  { %v811_v48 = vmul.f32 %v1484_v47, %v800_v8 }
 0x4a8   :  { %v813_v49 = vsub.f32 %v796_v34, %v811_v48 }
 0x4aa   :  { %v815_v50 = vmul.f32 %v813_v49, %v813_v49 }
 0x4ac   :  { %v817_v9 = vsel %vm123_vm0, %v815_v50, 0.0 }
 0x4ad   :  { %818 = vadd.xlane.f32.xlu0 %v817_v9 }
 0x4cc   :  { %v803_v51 = vpop.xlane.xlu1 %802 }
 0x4cd   :  { %v812_v52 = vmul.f32 %v1484_v47, %v803_v51 }
 0x4cf   :  { %v814_v46 = vsub.f32 %v797_v38, %v812_v52 }
 0x4d1   :  { %v816_v53 = vmul.f32 %v814_v46, %v814_v46 }
 0x4d3   :  { %v820_v54 = vsel %vm123_vm0, %v816_v53, 0.0 }
 0x4d4   :  { %821 = vadd.xlane.f32.xlu2 %v820_v54 }
 0x520   :  { %v819_v59 = vpop.xlane.xlu0 %818 }
 0x521   :  { %v823_v60 = vmul.f32 %v819_v59, %v1484_v47 }
 0x523   :  { %v825_v61 = vadd.f32 1e-05, %v823_v60 }
 0x525   :  { %1113 = vrsqrt.f32 %v825_v61  ;;  %vm833_vm6 = vweird.f32 %v825_v61 }
 0x52b   :  { %v1114_v62 = vpop.eup %1113 }
 0x52c   :  { %v828_v63 = vmul.f32 %v1114_v62, %v825_v61  ;;  %vm834_vm5 = vweird.f32 %v1114_v62 }
 0x52d   :  { %vm835_vm7 = vmor %vm833_vm6, %vm834_vm5 }
 0x52e   :  { %v829_v0 = vmul.f32 %v1114_v62, %v828_v63 }
 0x530   :  { %v830_v1 = vmul.f32 0.5, %v829_v0 }
 0x532   :  { %v831_v2 = vsub.f32 1.5, %v830_v1 }
 0x534   :  { %v832_v3 = vmul.f32 %v1114_v62, %v831_v2 }
 0x536   :  { %v836_v5 = vsel %vm835_vm7, %v1114_v62, %v832_v3  ;;  %v1077_v3 = vld [vmem:[%s1567_s15] ss:$0 sm:$0xff]  ;;  %s1234_s15 = smov [#allocation8]  }
 0x537   :  { %v847_v6 = vmul.f32 %v836_v5, %v813_v49 }
 0x539   :  { %v852_v10 = vmul.f32 %v1073_v4, %v847_v6  ;;  %v1078_v6 = vld [vmem:[%s1568_s16] ss:$0 sm:$0xff]  ;;  %s1000_s16 = sshll.u32 %s1234_s15, 4  ;;  %s1001_s16 = int_to_ptr.vmem [resolvable:$true] %s1000_s16 }
 0x53b   :  { %v857_v11 = vadd.f32 %v1074_v7, %v852_v10 }
 0x53d   :  { %1048 = vmatmul.msk.f32.vlgmr.msra.gmra.mxu2 %vm123_vm0, %v857_v11 }
 0x547   :  { %v822_v15 = vpop.xlane.xlu2 %821 }
 0x548   :  { %v824_v16 = vmul.f32 %v822_v15, %v1484_v47 }
 0x54a   :  { %v826_v18 = vadd.f32 1e-05, %v824_v16 }
 0x54c   :  { %1115 = vrsqrt.f32 %v826_v18  ;;  %vm843_vm9 = vweird.f32 %v826_v18 }
 0x552   :  { %v1116_v20 = vpop.eup %1115 }
 0x553   :  { %v838_v21 = vmul.f32 %v1116_v20, %v826_v18  ;;  %vm844_vm8 = vweird.f32 %v1116_v20 }
 0x554   :  { %vm845_vm10 = vmor %vm843_vm9, %vm844_vm8 }
 0x555   :  { %v839_v22 = vmul.f32 %v1116_v20, %v838_v21 }
 0x557   :  { %v840_v23 = vmul.f32 0.5, %v839_v22 }
 0x559   :  { %v841_v24 = vsub.f32 1.5, %v840_v23 }
 0x55b   :  { %v842_v25 = vmul.f32 %v1116_v20, %v841_v24 }
 0x55d   :  { %v846_v26 = vsel %vm845_vm10, %v1116_v20, %v842_v25 }
 0x55e   :  { %v848_v27 = vmul.f32 %v846_v26, %v814_v46 }
 0x560   :  { %v853_v28 = vmul.f32 %v1073_v4, %v848_v27 }
 0x562   :  { %v858_v29 = vadd.f32 %v1074_v7, %v853_v28 }
 0x564   :  { %1049 = vmatmul.msk.f32.gmra.mxu2 %vm123_vm0, %v858_v29 }
 0x5c0   :  { %v889_v34 = vpop.f32.mrf.mxu2 }
 0x5c1   :  { %v890_v35 = vadd.f32 %v1075_v33, %v889_v34 }
 0x5c3   :  { %v895_v36 = vmax.f32 %v890_v35, 0.0 }
 0x5c5   :  { %1050 = vmatmul.msk.f32.vlgmr.msrb.gmra.mxu3 %vm908_vm11, %v895_v36 }
 0x5e7   :  { %v892_v37 = vpop.f32.mrf.mxu2 }
 0x5e8   :  { %v893_v38 = vadd.f32 %v1075_v33, %v892_v37 }
 0x5ea   :  { %v896_v39 = vmax.f32 %v893_v38, 0.0 }
 0x5ec   :  { %1051 = vmatmul.msk.f32.gmra.mxu3 %vm908_vm11, %v896_v39 }
 0x648   :  { %v932_v41 = vpop.f32.mrf.mxu3 }
 0x649   :  { %v933_v42 = vadd.f32 %v1076_v40, %v932_v41 }
 0x64b   :  { %v938_v43 = vadd.f32 %v933_v42, %v857_v11 }
 0x64d   :  { %v940_v44 = vsel %vm123_vm0, %v938_v43, 0.0 }
 0x64e   :  { %941 = vadd.xlane.f32.xlu2 %v940_v44 }
 0x66f   :  { %v935_v45 = vpop.f32.mrf.mxu3 }
 0x670   :  { %v936_v8 = vadd.f32 %v1076_v40, %v935_v45 }
 0x672   :  { %v939_v48 = vadd.f32 %v936_v8, %v858_v29 }
 0x674   :  { %v943_v49 = vsel %vm123_vm0, %v939_v48, 0.0 }
 0x675   :  { %944 = vadd.xlane.f32.xlu2 %v943_v49 }
 0x6c1   :  { %v942_v50 = vpop.xlane.xlu2 %941 }
 0x6c2   :  { %v946_v9 = vmul.f32 %v942_v50, %v1484_v47 }
 0x6c4   :  { %v948_v51 = vsub.f32 %v938_v43, %v946_v9 }
 0x6c6   :  { %v950_v52 = vmul.f32 %v948_v51, %v948_v51 }
 0x6c8   :  { %v952_v46 = vsel %vm123_vm0, %v950_v52, 0.0 }
 0x6c9   :  { %953 = vadd.xlane.f32.xlu2 %v952_v46 }
 0x6e8   :  { %v945_v53 = vpop.xlane.xlu2 %944 }
 0x6e9   :  { %v947_v54 = vmul.f32 %v945_v53, %v1484_v47 }
 0x6eb   :  { %v949_v55 = vsub.f32 %v939_v48, %v947_v54 }
 0x6ed   :  { %v951_v56 = vmul.f32 %v949_v55, %v949_v55 }
 0x6ef   :  { %v955_v57 = vsel %vm123_vm0, %v951_v56, 0.0 }
 0x6f0   :  { %956 = vadd.xlane.f32.xlu2 %v955_v57 }
 0x73c   :  { %v954_v58 = vpop.xlane.xlu2 %953 }
 0x73d   :  { %v958_v59 = vmul.f32 %v954_v58, %v1484_v47 }
 0x73f   :  { %v960_v60 = vadd.f32 1e-05, %v958_v59 }
 0x741   :  { %1117 = vrsqrt.f32 %v960_v60  ;;  %vm968_vm13 = vweird.f32 %v960_v60 }
 0x747   :  { %v1118_v61 = vpop.eup %1117 }
 0x748   :  { %v963_v62 = vmul.f32 %v1118_v61, %v960_v60  ;;  %vm969_vm12 = vweird.f32 %v1118_v61 }
 0x749   :  { %vm970_vm14 = vmor %vm968_vm13, %vm969_vm12 }
 0x74a   :  { %v964_v63 = vmul.f32 %v1118_v61, %v963_v62 }
 0x74c   :  { %v965_v0 = vmul.f32 0.5, %v964_v63 }
 0x74e   :  { %v966_v1 = vsub.f32 1.5, %v965_v0 }
 0x750   :  { %v967_v2 = vmul.f32 %v1118_v61, %v966_v1 }
 0x752   :  { %v971_v4 = vsel %vm970_vm14, %v1118_v61, %v967_v2 }
 0x753   :  { %v982_v5 = vmul.f32 %v971_v4, %v948_v51 }
 0x755   :  { %v987_v7 = vmul.f32 %v1077_v3, %v982_v5 }
 0x757   :  { %v992_v10 = vadd.f32 %v1078_v6, %v987_v7 }
 0x759   :  { %994 = vst.msk [vmem:[#allocation8] sm:$0xff] %vm123_vm0, %v992_v10 }
 0x763   :  { %v957_v11 = vpop.xlane.xlu2 %956 }
 0x764   :  { %v959_v12 = vmul.f32 %v957_v11, %v1484_v47 }
 0x766   :  { %v961_v13 = vadd.f32 1e-05, %v959_v12 }
 0x768   :  { %1119 = vrsqrt.f32 %v961_v13  ;;  %vm978_vm1 = vweird.f32 %v961_v13 }
 0x76e   :  { %v1120_v14 = vpop.eup %1119 }
 0x76f   :  { %v973_v15 = vmul.f32 %v1120_v14, %v961_v13  ;;  %vm979_vm15 = vweird.f32 %v1120_v14 }
 0x770   :  { %vm980_vm2 = vmor %vm978_vm1, %vm979_vm15 }
 0x771   :  { %v974_v16 = vmul.f32 %v1120_v14, %v973_v15 }
 0x773   :  { %v975_v17 = vmul.f32 0.5, %v974_v16 }
 0x775   :  { %v976_v18 = vsub.f32 1.5, %v975_v17 }
 0x777   :  { %v977_v19 = vmul.f32 %v1120_v14, %v976_v18 }
 0x779   :  { %v981_v20 = vsel %vm980_vm2, %v1120_v14, %v977_v19 }
 0x77a   :  { %v983_v21 = vmul.f32 %v981_v20, %v949_v55 }
 0x77c   :  { %v988_v47 = vmul.f32 %v1077_v3, %v983_v21 }
 0x77e   :  { %v993_v22 = vadd.f32 %v1078_v6, %v988_v47 }
 0x780   :  { %995 = vst.msk [vmem:[#allocation8 + $0x8] sm:$0xff] %vm123_vm0, %v993_v22 }
 0x781   :  { %1008 = dma.vmem_to_hbm [thread:$0]  %s1001_s16, 256, %s1003_s0, [#allocation4], %s1224_s19, %s1224_s19, %s1225_s1  }
 0x782   :  { %1221 = dma.done.wait [#allocation4], 256  }
 0x783   :  { %1222 = vsyncadd [#allocation4], 4294967040 }
 0x784   :  { %1013 = vsyncpa [#allocation3], 1 }
 0x785   :  { %1014 = vsyncpa [#allocation6], 1 }
 0x786   :  { %1015 = vsyncpa [#allocation4], 1 }

</bundles_post_ra>
